<compile_context>
chip_gen: v7x
topology: tpu7x:2x2x1
jax: 0.10.0
libtpu: 0.0.40
codegen_flags: <defaults>
</compile_context>

<pallas_src>
import jax
import jax.numpy as jnp
from jax.experimental import pallas as pl
from jax.experimental.pallas import tpu as pltpu


_LANES = 128
_SUBLANES = 8
_TARGET_TILE_BYTES = 4 * 1024 * 1024  # per input buffer (Pallas double-buffers)
_MIN_PALLAS_BYTES = 1 << 20           # below this, XLA's fused reduce wins


def _round_up(x: int, m: int) -> int:
    return ((x + m - 1) // m) * m


def _pad_value(dtype):
    dtype = jnp.dtype(dtype)
    if jnp.issubdtype(dtype, jnp.floating):
        return float("-inf")
    if jnp.issubdtype(dtype, jnp.integer):
        return int(jnp.iinfo(dtype).min)
    if dtype == jnp.bool_:
        return False
    raise TypeError(f"unsupported dtype for max readout: {dtype}")


def _max_readout_kernel(x_ref, o_ref):
    # x_ref: (TB, TN, Df) input tile; o_ref: (TB, Df) resident accumulator.
    partial = jnp.max(x_ref[...], axis=1)

    @pl.when(pl.program_id(1) == 0)
    def _init():
        o_ref[...] = partial

    @pl.when(pl.program_id(1) != 0)
    def _accum():
        o_ref[...] = jnp.maximum(o_ref[...], partial)


def max_readout(seq: jax.Array, *, force_pallas: bool = False) -> jax.Array:
    """Pallas equivalent of MaxReadout: max over axis 1 of a (B, N, D) array."""
    B, N, D = seq.shape
    dtype = seq.dtype
    itemsize = jnp.dtype(dtype).itemsize

    # Tiny inputs: skip the kernel entirely.
    if not force_pallas and seq.size * itemsize < _MIN_PALLAS_BYTES:
        return jnp.max(seq, axis=1)

    # Lane folding: pack g consecutive nodes into lanes so vregs/stores are dense.
    g = _LANES // D if (D < _LANES and _LANES % D == 0) else 1
    df = g * D

    # Batch tile: sublane-dense output stores when possible; never pad batch.
    tb = _SUBLANES if B % _SUBLANES == 0 else B

    # Node tile: largest multiple of 8 keeping one input buffer ~4 MiB, then
    # split the (folded) node axis into equal-ish chunks to minimise padding.
    nf = -(-N // g)                      # folded node count
    nf8 = _round_up(nf, _SUBLANES)
    tn_max = max(
        _SUBLANES,
        (_TARGET_TILE_BYTES // (tb * df * itemsize)) // _SUBLANES * _SUBLANES,
    )
    steps = -(-nf8 // tn_max)
    tn = _round_up(-(-nf8 // steps), _SUBLANES)
    nf_pad = steps * tn
    n_pad = nf_pad * g

    # Pad nodes with the identity of max, then fold into lanes (contiguous
    # reshape -> free).
    x = seq
    if n_pad != N:
        x = jnp.pad(
            x, ((0, 0), (0, n_pad - N), (0, 0)), constant_values=_pad_value(dtype)
        )
    x = x.reshape(B, nf_pad, df)

    out = pl.pallas_call(
        _max_readout_kernel,
        out_shape=jax.ShapeDtypeStruct((B, df), dtype),
        grid_spec=pltpu.PrefetchScalarGridSpec(
            num_scalar_prefetch=0,
            grid=(B // tb, nf_pad // tn),
            in_specs=[pl.BlockSpec((tb, tn, df), lambda b, n: (b, n, 0))],
            out_specs=pl.BlockSpec((tb, df), lambda b, n: (b, 0)),
        ),
        compiler_params=pltpu.CompilerParams(
            dimension_semantics=("parallel", "arbitrary"),
        ),
    )(x)

    if g > 1:
        # Combine the g lane-folded partial maxima (tiny, (B, g, D)).
        out = jnp.max(out.reshape(B, g, D), axis=1)
    return out


if __name__ == "__main__":
    # MaxReadout has no parameters, so nothing to initialize.
    key = jax.random.PRNGKey(0)

    # Small shapes consistent with the module: batch=2, nodes=8, hidden=32.
    B, N, D = 2, 8, 32
    seq = jax.random.normal(key, (B, N, D), dtype=jnp.float32)
    out = jax.block_until_ready(max_readout(seq, force_pallas=True))
    ref = jnp.max(seq, axis=1)
    assert out.shape == (B, D) and out.dtype == seq.dtype
    assert jnp.array_equal(out, ref), "Pallas MaxReadout mismatch vs reference"

    # A second case exercising node-axis tiling, -inf padding, lane folding
    # (g=2) and the batched TB=8 / sublane-dense-output path.
    key2 = jax.random.PRNGKey(1)
    B2, N2, D2 = 8, 1000, 64
    seq2 = jax.random.normal(key2, (B2, N2, D2), dtype=jnp.float32)
    out2 = jax.block_until_ready(max_readout(seq2, force_pallas=True))
    ref2 = jnp.max(seq2, axis=1)
    assert out2.shape == (B2, D2)
    assert jnp.array_equal(out2, ref2), "Pallas MaxReadout mismatch (tiled case)"

    print("KERNEL_OK")
</pallas_src>

<mosaic_0001>
module attributes {stable_mosaic.version = 11 : i64} {
  func.func @_max_readout_kernel(%arg0: i32, %arg1: i32, %arg2: memref<2x8x128xf32, #tpu.memory_space<vmem>>, %arg3: memref<2x128xf32, #tpu.memory_space<vmem>>) attributes {dimension_semantics = [#tpu.dimension_semantics<parallel>, #tpu.dimension_semantics<arbitrary>], iteration_bounds = array<i64: 1, 1>, scalar_prefetch = 0 : i64, scratch_operands = 0 : i64, tpu.core_type = #tpu.core_type<tc>, window_params = [{transform_indices = @transform_0, window_bounds = array<i64: 2, 8, 128>}, {transform_indices = @transform_1, window_bounds = array<i64: 2, 128>}]} {
    %c0 = arith.constant 0 : index
    %c0_0 = arith.constant 0 : index
    %c0_1 = arith.constant 0 : index
    %0 = vector.load %arg2[%c0, %c0_0, %c0_1] : memref<2x8x128xf32, #tpu.memory_space<vmem>>, vector<2x8x128xf32>
    %cst = arith.constant dense<0xFF800000> : vector<2x128xf32>
    %1 = vector.multi_reduction <maximumf>, %0, %cst [1] : vector<2x8x128xf32> to vector<2x128xf32>
    %c0_i32 = arith.constant 0 : i32
    %2 = arith.cmpi eq, %arg1, %c0_i32 : i32
    %3 = arith.extui %2 : i1 to i32
    %c0_i32_2 = arith.constant 0 : i32
    %4 = arith.cmpi ne, %3, %c0_i32_2 : i32
    scf.if %4 {
      %c0_5 = arith.constant 0 : index
      %c0_6 = arith.constant 0 : index
      %8 = vector.load %arg3[%c0_5, %c0_6] : memref<2x128xf32, #tpu.memory_space<vmem>>, vector<2x128xf32>
      tpu.vector_store %arg3[%c0_5, %c0_6], %1 {strides = array<i32>} : memref<2x128xf32, #tpu.memory_space<vmem>>, vector<2x128xf32>,
    } else {
    }
    %c0_i32_3 = arith.constant 0 : i32
    %5 = arith.cmpi ne, %arg1, %c0_i32_3 : i32
    %6 = arith.extui %5 : i1 to i32
    %c0_i32_4 = arith.constant 0 : i32
    %7 = arith.cmpi ne, %6, %c0_i32_4 : i32
    scf.if %7 {
      %c0_5 = arith.constant 0 : index
      %c0_6 = arith.constant 0 : index
      %8 = vector.load %arg3[%c0_5, %c0_6] : memref<2x128xf32, #tpu.memory_space<vmem>>, vector<2x128xf32>
      %9 = arith.maximumf %8, %1 : vector<2x128xf32>
      %c0_7 = arith.constant 0 : index
      %c0_8 = arith.constant 0 : index
      %10 = vector.load %arg3[%c0_7, %c0_8] : memref<2x128xf32, #tpu.memory_space<vmem>>, vector<2x128xf32>
      tpu.vector_store %arg3[%c0_7, %c0_8], %9 {strides = array<i32>} : memref<2x128xf32, #tpu.memory_space<vmem>>, vector<2x128xf32>,
    } else {
    }
    return
  }
  func.func @transform_0(%arg0: i32, %arg1: i32) -> (i32, i32, i32) {
    %c0_i32 = arith.constant 0 : i32
    %c0_i32_0 = arith.constant 0 : i32
    return %arg0, %arg1, %c0_i32 : i32, i32, i32
  }
  func.func @transform_1(%arg0: i32, %arg1: i32) -> (i32, i32) {
    %c0_i32 = arith.constant 0 : i32
    %c0_i32_0 = arith.constant 0 : i32
    return %arg0, %c0_i32 : i32, i32
  }
}

</mosaic_0001>

<bundles_post_ra>
// kernel: tpu_custom_call.1
= control target key start
LH: loop header
LB: loop body
LE: loop exit
PB: predicated region body
PF: predicated region fallthrough
CT: control target
= control target key end

     0   :  { %6 = vsyncpa [#allocation3], 0  ;;  %s164_s0 = inlined_call_operand.hbm [shape: f32[2,8,128], index: 0, kind: input, shape index: {}]   ;;  %s165_s1 = inlined_call_operand.hbm [shape: f32[2,128], index: 1, kind: output, shape index: {}]  }
   0x1   :  { %7 = vsyncpa [#allocation4], 0  ;;  %s126_s6 = smov [#allocation2]   ;;  %s78_s10 = scalar_lea.hbm %s164_s0, 256 }
   0x2   :  { %s13_s7 = sshll.u32 %s126_s6, 4  ;;  %p79_p0 = scmp.ne.s32.totalorder %s164_s0, %s78_s10  ;;  %s14_s7 = int_to_ptr.vmem [resolvable:$true] %s13_s7 }
   0x3   :  { %p82_p1 = scmp.lt.u32.totalorder %s78_s10, %s164_s0 }
   0x5   :  { %p84_p2 = pnand %p82_p1, %p79_p0 }
   0x7   :  { %87 = shalt.err (!%p84_p2)
}
   0x8   :  { %s88_s15 = scalar_lea.vmem %s14_s7, 256  ;;  %p93_p4 = scmp.lt.s32.totalorder %s14_s7, %s14_s7 }
   0x9   :  { %p89_p3 = scmp.ne.s32.totalorder %s14_s7, %s88_s15  ;;  %p94_p5 = scmp.lt.s32.totalorder %s88_s15, %s88_s15 }
   0xb   :  { %p95_p6 = por %p94_p5, %p93_p4 }
   0xd   :  { %p96_p7 = pnand %p95_p6, %p89_p3 }
   0xf   :  { %99 = shalt.err (!%p96_p7)
}
  0x10   :  { %s127_s16 = smov 128   ;;  %s128_s17 = smov 8  }
  0x11   :  { %19 = dma.hbm_to_vmem [thread:$0]  %s164_s0, 256, %s14_s7, [#allocation3], %s127_s16, %s127_s16, %s128_s17  }
  0x12   :  { %122 = dma.done.wait [#allocation3], 256  }
  0x13   :  { %123 = vsyncadd [#allocation3], 4294967040  ;;  %v23_v0 = vld [vmem:[#allocation2] sm:$0xff]  ;;  %v24_v1 = vld [vmem:[#allocation2 + $0x8] sm:$0xff]  ;;  %s129_s20 = smov [#allocation5]   ;;  %vm43_vm0 = vcmask 1041409  }
  0x14   :  { %v25_v2 = vrot.slane %v23_v0, 4  ;;  %v31_v3 = vrot.slane %v24_v1, 4  ;;  %s65_s21 = sshll.u32 %s129_s20, 4  ;;  %s66_s21 = int_to_ptr.vmem [resolvable:$true] %s65_s21 }
  0x15   :  { %s100_s0 = scalar_lea.vmem %s66_s21, 32  ;;  %p105_p9 = scmp.lt.s32.totalorder %s66_s21, %s66_s21 }
  0x16   :  { %v26_v4 = vmax.f32 %v23_v0, %v25_v2  ;;  %v32_v5 = vmax.f32 %v24_v1, %v31_v3  ;;  %p101_p8 = scmp.ne.s32.totalorder %s66_s21, %s100_s0  ;;  %p106_p10 = scmp.lt.s32.totalorder %s100_s0, %s100_s0 }
  0x18   :  { %v27_v6 = vrot.slane %v26_v4, 2  ;;  %v33_v7 = vrot.slane %v32_v5, 2  ;;  %p107_p11 = por %p106_p10, %p105_p9 }
  0x1a   :  { %v28_v8 = vmax.f32 %v26_v4, %v27_v6  ;;  %v34_v9 = vmax.f32 %v32_v5, %v33_v7  ;;  %p108_p12 = pnand %p107_p11, %p101_p8 }
  0x1c   :  { %v29_v10 = vrot.slane %v28_v8, 1  ;;  %v35_v11 = vrot.slane %v34_v9, 1 }
  0x1e   :  { %v30_v12 = vmax.f32 %v28_v8, %v29_v10  ;;  %v36_v13 = vmax.f32 %v34_v9, %v35_v11 }
  0x20   :  { %v44_v14 = vsel %vm43_vm0, %v36_v13, %v30_v12 }
  0x21   :  { %46 = vst [vmem:[#allocation5] sm:$0x3] %v44_v14 }
  0x22   :  { %111 = shalt.err (!%p108_p12)
}
  0x23   :  { %s112_s24 = scalar_lea.hbm %s165_s1, 32 }
  0x24   :  { %p113_p13 = scmp.ne.s32.totalorder %s165_s1, %s112_s24  ;;  %p116_p0 = scmp.lt.u32.totalorder %s112_s24, %s165_s1 }
  0x26   :  { %p118_p1 = pnand %p116_p0, %p113_p13 }
  0x28   :  { %121 = shalt.err (!%p118_p1)
}
  0x29   :  { %68 = dma.vmem_to_hbm [thread:$0]  %s66_s21, 32, %s165_s1, [#allocation4]  }
  0x2a   :  { %124 = dma.done.wait [#allocation4], 32  }
  0x2b   :  { %125 = vsyncadd [#allocation4], 4294967264 }
  0x2c   :  { %72 = vsyncpa [#allocation3], 1 }
  0x2d   :  { %73 = vsyncpa [#allocation4], 1 }

</bundles_post_ra>
